<compile_context>
chip_gen: v7x
topology: tpu7x:2x2x1
jax: 0.10.0
libtpu: 0.0.40
codegen_flags: <defaults>
</compile_context>

<pallas_src>
import jax
import jax.numpy as jnp
from jax.experimental import pallas as pl
from jax.experimental.pallas import tpu as pltpu


def _round_up(x, m):
    return (x + m - 1) // m * m


def _patch_embed_kernel(lhs_ref, w_ref, add_ref, o_ref):
    # lhs_ref: (TN, K_pad)    im2col patches (global row 0 is zeros -> cls row)
    # w_ref:   (K_pad, E_pad) conv weight, MXU-canonical (contraction on sublanes)
    # add_ref: (TN, E_pad)    f32 additive term: cls+pos0 / pos+bias / zero pad
    # o_ref:   (TN, E_pad)
    acc = jnp.dot(lhs_ref[...], w_ref[...], preferred_element_type=jnp.float32)
    o_ref[...] = (acc + add_ref[...]).astype(o_ref.dtype)


def minigpt_patch_embed(x, weight, bias, cls_token, pos_embed, patch_size,
                        *, mxu_dtype=None, row_tile=256):
    """x: (1, C, H, W) NCHW. Returns (1, G*G + 1, E) in x.dtype."""
    bs, C, H, W = x.shape
    assert bs == 1, "module hard-codes bs = 1"
    E = weight.shape[0]
    P = patch_size
    G = H // P
    assert H == G * P and W == G * P, "image size must be divisible by patch size"
    N = G * G
    N_out = N + 1
    K = C * P * P

    if mxu_dtype is None:
        mxu_dtype = x.dtype          # bf16 inputs -> bf16 MXU operands automatically

    LANE, SUB = 128, 8
    E_pad = _round_up(E, LANE)                                   # lane-dense output
    K_pad = _round_up(K, LANE)                                   # lane-dense lhs / aligned rhs sublanes
    TN = _round_up(min(row_tile, _round_up(N_out, SUB)), SUB)    # 8-aligned row tile
    N_pad = _round_up(N_out, TN)
    grid_n = N_pad // TN

    # ---- One-time HBM layout plumbing (no compute hoisted, only gathers/transposes). ----
    # im2col: patch n = gh*G + gw, feature k = c*P*P + kh*P + kw  (matches weight.reshape(E, K)).
    patches = x.reshape(C, G, P, G, P).transpose(1, 3, 0, 2, 4).reshape(N, K)
    lhs = jnp.zeros((N_pad, K_pad), mxu_dtype)
    lhs = lhs.at[1:N_out, :K].set(patches.astype(mxu_dtype))     # row 0 stays zero (cls row)

    rhs = jnp.zeros((K_pad, E_pad), mxu_dtype)
    rhs = rhs.at[:K, :E].set(weight.reshape(E, K).T.astype(mxu_dtype))

    pos = pos_embed.reshape(N_out, E).astype(jnp.float32)
    row0 = cls_token.reshape(1, E).astype(jnp.float32) + pos[0:1]
    rows = pos[1:]
    if bias is not None:
        rows = rows + bias.reshape(1, E).astype(jnp.float32)     # fold conv bias into pos rows
    add = jnp.zeros((N_pad, E_pad), jnp.float32)
    add = add.at[0:1, :E].set(row0).at[1:N_out, :E].set(rows)

    # ---- Cost / VMEM accounting (per-array itemsizes). ----
    out_itemsize = jnp.dtype(x.dtype).itemsize
    cost = pl.CostEstimate(
        flops=2 * N_pad * K_pad * E_pad,
        transcendentals=0,
        bytes_accessed=int(lhs.size * lhs.dtype.itemsize
                           + rhs.size * rhs.dtype.itemsize
                           + add.size * add.dtype.itemsize
                           + N_pad * E_pad * out_itemsize))
    mxu_itemsize = jnp.dtype(mxu_dtype).itemsize
    blk_bytes = (2 * TN * K_pad * mxu_itemsize        # lhs, double buffered
                 + 2 * K_pad * E_pad * mxu_itemsize   # resident weight (+ buffer)
                 + 2 * TN * E_pad * 4                 # add, double buffered
                 + 2 * TN * E_pad * out_itemsize      # out, double buffered
                 + TN * E_pad * 4)                    # f32 acc headroom
    vmem_limit = int(min(max(blk_bytes + (2 << 20), 16 << 20), 100 << 20))

    # ---- Fused kernel: one dot + one add per row tile, full-block aligned stores. ----
    out = pl.pallas_call(
        _patch_embed_kernel,
        out_shape=jax.ShapeDtypeStruct((N_pad, E_pad), x.dtype),
        grid_spec=pltpu.PrefetchScalarGridSpec(
            num_scalar_prefetch=0,
            grid=(grid_n,),
            in_specs=[
                pl.BlockSpec((TN, K_pad), lambda i: (i, 0)),
                pl.BlockSpec((K_pad, E_pad), lambda i: (0, 0)),   # weight stays resident
                pl.BlockSpec((TN, E_pad), lambda i: (i, 0)),
            ],
            out_specs=pl.BlockSpec((TN, E_pad), lambda i: (i, 0)),
        ),
        compiler_params=pltpu.CompilerParams(
            dimension_semantics=("parallel",),     # v7x: both TensorCores split row tiles
            vmem_limit_bytes=vmem_limit),
        cost_estimate=cost,
    )(lhs, rhs, add)

    return out[:N_out, :E][None, :, :]


if __name__ == "__main__":
    # Small, module-consistent shapes (lane-dense E, sublane-friendly G=8).
    image_size = 32
    patch_size = 4
    embed_dim = 128
    in_chans = 4
    dtype = jnp.float32

    G = image_size // patch_size
    key = jax.random.PRNGKey(0)
    k_x, k_w, k_b, k_cls, k_pos = jax.random.split(key, 5)

    x = jax.random.normal(k_x, (1, in_chans, image_size, image_size), dtype)
    weight = jax.random.normal(
        k_w, (embed_dim, in_chans, patch_size, patch_size), dtype) * 0.05
    bias = jax.random.normal(k_b, (embed_dim,), dtype) * 0.05
    cls_token = jax.random.normal(k_cls, (1, 1, embed_dim), dtype) * 0.02
    pos_embed = jax.random.normal(k_pos, (1, G * G + 1, embed_dim), dtype) * 0.02

    # Reference (plain JAX conv) to sanity-check semantics.
    conv = jax.lax.conv_general_dilated(
        x, weight, window_strides=(patch_size, patch_size), padding="VALID",
        dimension_numbers=("NCHW", "OIHW", "NCHW"))
    conv = conv + bias.reshape(1, embed_dim, 1, 1)
    ref = conv.reshape(1, embed_dim, G * G).transpose(0, 2, 1)
    ref = jnp.concatenate([cls_token, ref], axis=1) + pos_embed

    # f32 MXU-operand path (strict tolerance).
    out = minigpt_patch_embed(x, weight, bias, cls_token, pos_embed, patch_size)
    out = jax.block_until_ready(out)
    assert out.shape == (1, G * G + 1, embed_dim)
    assert jnp.allclose(out, ref, atol=5e-4, rtol=5e-4)

    # bf16 MXU-operand path (v6e/v7x fast path; f32 accumulation), looser tolerance.
    out_bf16 = minigpt_patch_embed(x, weight, bias, cls_token, pos_embed, patch_size,
                                   mxu_dtype=jnp.bfloat16)
    out_bf16 = jax.block_until_ready(out_bf16)
    assert jnp.allclose(out_bf16, ref, atol=2e-2, rtol=2e-2)

    print("KERNEL_OK")
</pallas_src>

<mosaic_0001>
module attributes {stable_mosaic.version = 11 : i64} {
  func.func @_patch_embed_kernel(%arg0: i32, %arg1: memref<72x128xf32, #tpu.memory_space<vmem>>, %arg2: memref<128x128xf32, #tpu.memory_space<vmem>>, %arg3: memref<72x128xf32, #tpu.memory_space<vmem>>, %arg4: memref<72x128xf32, #tpu.memory_space<vmem>>) attributes {dimension_semantics = [#tpu.dimension_semantics<parallel>], iteration_bounds = array<i64: 1>, scalar_prefetch = 0 : i64, scratch_operands = 0 : i64, tpu.core_type = #tpu.core_type<tc>, window_params = [{transform_indices = @transform_0, window_bounds = array<i64: 72, 128>}, {pipeline_mode = #tpu.pipeline_mode<synchronous>, transform_indices = @transform_1, window_bounds = array<i64: 128, 128>}, {transform_indices = @transform_2, window_bounds = array<i64: 72, 128>}, {transform_indices = @transform_3, window_bounds = array<i64: 72, 128>}]} {
    %c0 = arith.constant 0 : index
    %c0_0 = arith.constant 0 : index
    %0 = vector.load %arg1[%c0, %c0_0] : memref<72x128xf32, #tpu.memory_space<vmem>>, vector<72x128xf32>
    %c0_1 = arith.constant 0 : index
    %c0_2 = arith.constant 0 : index
    %1 = vector.load %arg2[%c0_1, %c0_2] : memref<128x128xf32, #tpu.memory_space<vmem>>, vector<128x128xf32>
    %cst = arith.constant dense<0.000000e+00> : vector<72x128xf32>
    %2 = tpu.matmul %0, %1, %cst {dimension_numbers = #tpu.dot_dimension_numbers<[1], [0], [0], [1], [0, 0, 1, 1], [], []>} : vector<72x128xf32>, vector<128x128xf32>, vector<72x128xf32> -> vector<72x128xf32>
    %c0_3 = arith.constant 0 : index
    %c0_4 = arith.constant 0 : index
    %3 = vector.load %arg3[%c0_3, %c0_4] : memref<72x128xf32, #tpu.memory_space<vmem>>, vector<72x128xf32>
    %4 = arith.addf %2, %3 : vector<72x128xf32>
    %c0_5 = arith.constant 0 : index
    %c0_6 = arith.constant 0 : index
    %5 = vector.load %arg4[%c0_5, %c0_6] : memref<72x128xf32, #tpu.memory_space<vmem>>, vector<72x128xf32>
    tpu.vector_store %arg4[%c0_5, %c0_6], %4 {strides = array<i32>} : memref<72x128xf32, #tpu.memory_space<vmem>>, vector<72x128xf32>,
    return
  }
  func.func @transform_0(%arg0: i32) -> (i32, i32) {
    %c0_i32 = arith.constant 0 : i32
    %c0_i32_0 = arith.constant 0 : i32
    return %arg0, %c0_i32 : i32, i32
  }
  func.func @transform_1(%arg0: i32) -> (i32, i32) {
    %c0_i32 = arith.constant 0 : i32
    %c0_i32_0 = arith.constant 0 : i32
    %c0_i32_1 = arith.constant 0 : i32
    return %c0_i32, %c0_i32_0 : i32, i32
  }
  func.func @transform_2(%arg0: i32) -> (i32, i32) {
    %c0_i32 = arith.constant 0 : i32
    %c0_i32_0 = arith.constant 0 : i32
    return %arg0, %c0_i32 : i32, i32
  }
  func.func @transform_3(%arg0: i32) -> (i32, i32) {
    %c0_i32 = arith.constant 0 : i32
    %c0_i32_0 = arith.constant 0 : i32
    return %arg0, %c0_i32 : i32, i32
  }
}

</mosaic_0001>

<bundles_post_ra>
// kernel: tpu_custom_call.1
= control target key start
LH: loop header
LB: loop body
LE: loop exit
PB: predicated region body
PF: predicated region fallthrough
CT: control target
= control target key end

     0   :  { %8 = vsyncpa [#allocation3], 0  ;;  %s568_s0 = inlined_call_operand.hbm [shape: f32[72,128], index: 0, kind: input, shape index: {}]   ;;  %s569_s1 = inlined_call_operand.hbm [shape: f32[128,128], index: 1, kind: input, shape index: {}]   ;;  %s570_s2 = inlined_call_operand.hbm [shape: f32[72,128], index: 2, kind: input, shape index: {}]   ;;  %s571_s3 = inlined_call_operand.hbm [shape: f32[72,128], index: 3, kind: output, shape index: {}]  }
   0x1   :  { %9 = vsyncpa [#allocation6], 0 }
   0x2   :  { %10 = vsyncpa [#allocation4], 0  ;;  %s454_s12 = smov [#allocation5]   ;;  %s455_s14 = smov [#allocation2]  }
   0x3   :  { %s28_s13 = sshll.u32 %s454_s12, 4  ;;  %s16_s15 = sshll.u32 %s455_s14, 4  ;;  %s29_s13 = int_to_ptr.vmem [resolvable:$true] %s28_s13  ;;  %s483_s15 = int_to_ptr.vmem [resolvable:$true] %s16_s15 }
   0x4   :  { %s360_s18 = scalar_lea.hbm %s569_s1, 2048 }
   0x5   :  { %p361_p0 = scmp.ne.s32.totalorder %s569_s1, %s360_s18  ;;  %p364_p1 = scmp.lt.u32.totalorder %s360_s18, %s569_s1 }
   0x7   :  { %p366_p2 = pnand %p364_p1, %p361_p0 }
   0x9   :  { %369 = shalt.err (!%p366_p2)
}
   0xa   :  { %s370_s23 = scalar_lea.vmem %s29_s13, 2048  ;;  %p375_p4 = scmp.lt.s32.totalorder %s29_s13, %s29_s13 }
   0xb   :  { %p371_p3 = scmp.ne.s32.totalorder %s29_s13, %s370_s23  ;;  %p376_p5 = scmp.lt.s32.totalorder %s370_s23, %s370_s23 }
   0xd   :  { %p377_p6 = por %p376_p5, %p375_p4 }
   0xf   :  { %p378_p7 = pnand %p377_p6, %p371_p3 }
  0x11   :  { %381 = shalt.err (!%p378_p7)
}
  0x12   :  { %s456_s24 = smov 128   ;;  %s457_s25 = smov 8  }
  0x13   :  { %34 = dma.hbm_to_vmem [thread:$0]  %s569_s1, 2048, %s29_s13, [#allocation6], %s456_s24, %s456_s24, %s457_s25  }
  0x14   :  { %s382_s30 = scalar_lea.hbm %s568_s0, 1152 }
  0x15   :  { %p383_p8 = scmp.ne.s32.totalorder %s568_s0, %s382_s30  ;;  %p386_p9 = scmp.lt.u32.totalorder %s382_s30, %s568_s0 }
  0x17   :  { %p388_p10 = pnand %p386_p9, %p383_p8 }
  0x19   :  { %391 = shalt.err (!%p388_p10)
}
  0x1a   :  { %s392_s8 = scalar_lea.vmem %s483_s15, 1152  ;;  %p397_p12 = scmp.lt.s32.totalorder %s483_s15, %s483_s15 }
  0x1b   :  { %p393_p11 = scmp.ne.s32.totalorder %s483_s15, %s392_s8  ;;  %p398_p13 = scmp.lt.s32.totalorder %s392_s8, %s392_s8 }
  0x1d   :  { %p399_p0 = por %p398_p13, %p397_p12 }
  0x1f   :  { %p400_p1 = pnand %p399_p0, %p393_p11 }
  0x21   :  { %403 = shalt.err (!%p400_p1)
}
  0x22   :  { %22 = dma.hbm_to_vmem [thread:$0]  %s568_s0, 1152, %s483_s15, [#allocation3], %s456_s24, %s456_s24, %s457_s25  }
  0x23   :  { %s458_s10 = smov [#allocation7]   ;;  %s404_s14 = scalar_lea.hbm %s570_s2, 1152 }
  0x24   :  { %s40_s11 = sshll.u32 %s458_s10, 4  ;;  %p405_p2 = scmp.ne.s32.totalorder %s570_s2, %s404_s14  ;;  %s41_s11 = int_to_ptr.vmem [resolvable:$true] %s40_s11 }
  0x25   :  { %p408_p3 = scmp.lt.u32.totalorder %s404_s14, %s570_s2 }
  0x27   :  { %p410_p4 = pnand %p408_p3, %p405_p2 }
  0x29   :  { %413 = shalt.err (!%p410_p4)
}
  0x2a   :  { %s414_s20 = scalar_lea.vmem %s41_s11, 1152  ;;  %p419_p6 = scmp.lt.s32.totalorder %s41_s11, %s41_s11 }
  0x2b   :  { %p415_p5 = scmp.ne.s32.totalorder %s41_s11, %s414_s20  ;;  %p420_p7 = scmp.lt.s32.totalorder %s414_s20, %s414_s20 }
  0x2d   :  { %p421_p8 = por %p420_p7, %p419_p6 }
  0x2f   :  { %p422_p9 = pnand %p421_p8, %p415_p5 }
  0x31   :  { %425 = shalt.err (!%p422_p9)
}
  0x32   :  { %46 = dma.hbm_to_vmem [thread:$0]  %s570_s2, 1152, %s41_s11, [#allocation6], %s456_s24, %s456_s24, %s457_s25  }
  0x33   :  { %448 = dma.done.wait [#allocation3], 1152  }
  0x34   :  { %449 = vsyncadd [#allocation3], 4294966144 }
  0x35   :  { %450 = dma.done.wait [#allocation6], 3200  }
  0x36   :  { %451 = vsyncadd [#allocation6], 4294964096  ;;  %v459_v0 = vmov 0.0|0.0   ;;  %vm460_vm0 = vmmov 0   ;;  %v461_v1 = vmov 0.0   ;;  %v65_v2 = vld [vmem:[#allocation5] sm:$0xff] }
  0x37   :  { %311 = vmatprep.subr.bf16.mxu0 %v459_v0  ;;  %335 = vmatprep.subr.bf16.mxu1 %v459_v0  ;;  %v66_v3 = vld [vmem:[#allocation5 + $0x8] sm:$0xff]  ;;  %v67_v4 = vld [vmem:[#allocation5 + $0x10] sm:$0xff]  ;;  %v68_v6 = vld [vmem:[#allocation5 + $0x18] sm:$0xff]  ;;  %s462_s2 = smov [#allocation8]  }
  0x38   :  { %284 = vmatprep.mubr.msk.f32.mxu0 %vm460_vm0, %v461_v1  ;;  %299 = vmatprep.mubr.msk.f32.mxu1 %vm460_vm0, %v461_v1  ;;  %v312_v5 = vpack.c.bf16 %v66_v3, %v65_v2  ;;  %v315_v7 = vpack.c.bf16 %v68_v6, %v67_v4  ;;  %v69_v8 = vld [vmem:[#allocation5 + $0x20] sm:$0xff]  ;;  %v70_v9 = vld [vmem:[#allocation5 + $0x28] sm:$0xff]  ;;  %v71_v11 = vld [vmem:[#allocation5 + $0x30] sm:$0xff]  ;;  %s214_s21 = sshll.u32 %s462_s2, 4  ;;  %s215_s21 = int_to_ptr.vmem [resolvable:$true] %s214_s21 }
  0x39   :  { %v318_v10 = vpack.c.bf16 %v70_v9, %v69_v8  ;;  %v72_v12 = vld [vmem:[#allocation5 + $0x38] sm:$0xff]  ;;  %v73_v14 = vld [vmem:[#allocation5 + $0x40] sm:$0xff]  ;;  %v74_v15 = vld [vmem:[#allocation5 + $0x48] sm:$0xff]  ;;  %s426_s22 = scalar_lea.vmem %s215_s21, 1152  ;;  %p431_p11 = scmp.lt.s32.totalorder %s215_s21, %s215_s21 }
  0x3a   :  { %313 = vmatpush3.bf16.msra.mxu0 %v312_v5  ;;  %343 = vmatpush3.bf16.msra.mxu1 %v312_v5  ;;  %v321_v13 = vpack.c.bf16 %v72_v12, %v71_v11  ;;  %v324_v16 = vpack.c.bf16 %v74_v15, %v73_v14  ;;  %v75_v17 = vld [vmem:[#allocation5 + $0x50] sm:$0xff]  ;;  %v76_v18 = vld [vmem:[#allocation5 + $0x58] sm:$0xff]  ;;  %v77_v20 = vld [vmem:[#allocation5 + $0x60] sm:$0xff]  ;;  %p427_p10 = scmp.ne.s32.totalorder %s215_s21, %s426_s22  ;;  %p432_p12 = scmp.lt.s32.totalorder %s426_s22, %s426_s22 }
  0x3b   :  { %314 = vmatprep.subr.bf16.mxu0 %v459_v0  ;;  %336 = vmatprep.subr.bf16.mxu1 %v459_v0  ;;  %v327_v19 = vpack.c.bf16 %v76_v18, %v75_v17  ;;  %v78_v21 = vld [vmem:[#allocation5 + $0x68] sm:$0xff]  ;;  %v79_v23 = vld [vmem:[#allocation5 + $0x70] sm:$0xff]  ;;  %v80_v24 = vld [vmem:[#allocation5 + $0x78] sm:$0xff] }
  0x3c   :  { %v330_v22 = vpack.c.bf16 %v78_v21, %v77_v20  ;;  %v333_v25 = vpack.c.bf16 %v80_v24, %v79_v23  ;;  %v56_v26 = vld [vmem:[#allocation2] sm:$0xff]  ;;  %v61_v27 = vld [vmem:[#allocation2 + $0x28] sm:$0xff]  ;;  %v62_v29 = vld [vmem:[#allocation2 + $0x30] sm:$0xff]  ;;  %p433_p13 = por %p432_p12, %p431_p11 }
  0x3d   :  { %v57_v28 = vld [vmem:[#allocation2 + $0x8] sm:$0xff]  ;;  %v58_v30 = vld [vmem:[#allocation2 + $0x10] sm:$0xff]  ;;  %v63_v31 = vld [vmem:[#allocation2 + $0x38] sm:$0xff] }
  0x3e   :  { %316 = vmatpush3.bf16.msra.mxu0 %v315_v7  ;;  %344 = vmatpush3.bf16.msra.mxu1 %v315_v7  ;;  %v59_v32 = vld [vmem:[#allocation2 + $0x18] sm:$0xff]  ;;  %v64_v33 = vld [vmem:[#allocation2 + $0x40] sm:$0xff]  ;;  %v81_v35 = vld [vmem:[#allocation7] sm:$0xff]  ;;  %p434_p0 = pnand %p433_p13, %p427_p10 }
  0x3f   :  { %317 = vmatprep.subr.bf16.mxu0 %v459_v0  ;;  %337 = vmatprep.subr.bf16.mxu1 %v459_v0  ;;  %v60_v34 = vld [vmem:[#allocation2 + $0x20] sm:$0xff]  ;;  %v86_v36 = vld [vmem:[#allocation7 + $0x28] sm:$0xff]  ;;  %v87_v44 = vld [vmem:[#allocation7 + $0x30] sm:$0xff] }
  0x40   :  { %v82_v43 = vld [vmem:[#allocation7 + $0x8] sm:$0xff]  ;;  %v83_v51 = vld [vmem:[#allocation7 + $0x10] sm:$0xff]  ;;  %v88_v52 = vld [vmem:[#allocation7 + $0x38] sm:$0xff] }
  0x41   :  { %v84_v59 = vld [vmem:[#allocation7 + $0x18] sm:$0xff]  ;;  %v89_v60 = vld [vmem:[#allocation7 + $0x40] sm:$0xff] }
  0x42   :  { %319 = vmatpush3.bf16.msra.mxu0 %v318_v10  ;;  %345 = vmatpush3.bf16.msra.mxu1 %v318_v10  ;;  %v85_v3 = vld [vmem:[#allocation7 + $0x20] sm:$0xff] }
  0x43   :  { %320 = vmatprep.subr.bf16.mxu0 %v459_v0  ;;  %338 = vmatprep.subr.bf16.mxu1 %v459_v0 }
  0x46   :  { %322 = vmatpush3.bf16.msra.mxu0 %v321_v13  ;;  %346 = vmatpush3.bf16.msra.mxu1 %v321_v13 }
  0x47   :  { %323 = vmatprep.subr.bf16.mxu0 %v459_v0  ;;  %339 = vmatprep.subr.bf16.mxu1 %v459_v0 }
  0x4a   :  { %325 = vmatpush3.bf16.msra.mxu0 %v324_v16  ;;  %347 = vmatpush3.bf16.msra.mxu1 %v324_v16 }
  0x4b   :  { %326 = vmatprep.subr.bf16.mxu0 %v459_v0  ;;  %340 = vmatprep.subr.bf16.mxu1 %v459_v0 }
  0x4e   :  { %328 = vmatpush3.bf16.msra.mxu0 %v327_v19  ;;  %348 = vmatpush3.bf16.msra.mxu1 %v327_v19 }
  0x4f   :  { %329 = vmatprep.subr.bf16.mxu0 %v459_v0  ;;  %341 = vmatprep.subr.bf16.mxu1 %v459_v0 }
  0x52   :  { %331 = vmatpush3.bf16.msra.mxu0 %v330_v22  ;;  %349 = vmatpush3.bf16.msra.mxu1 %v330_v22 }
  0x53   :  { %332 = vmatprep.subr.bf16.mxu0 %v459_v0  ;;  %342 = vmatprep.subr.bf16.mxu1 %v459_v0 }
  0x56   :  { %334 = vmatpush3.bf16.msra.mxu0 %v333_v25  ;;  %350 = vmatpush3.bf16.msra.mxu1 %v333_v25 }
  0x59   :  { %285 = vmatmul.mubr.f32.vlgmr.msra.gmra.mrb[0].mxu0 %v56_v26  ;;  %300 = vmatmul.mubr.f32.vlgmr.msra.gmra.mrb[0].mxu1 %v61_v27 }
  0x5a   :  { %287 = vmatprep.mubr.msk.f32.mxu0 %vm460_vm0, %v461_v1  ;;  %302 = vmatprep.mubr.msk.f32.mxu1 %vm460_vm0, %v461_v1 }
  0x5d   :  { %288 = vmatmul.mubr.f32.gmra.mrb[2].mxu0 %v57_v28  ;;  %303 = vmatmul.mubr.f32.gmra.mrb[2].mxu1 %v62_v29 }
  0x5e   :  { %290 = vmatprep.mubr.msk.f32.mxu0 %vm460_vm0, %v461_v1  ;;  %305 = vmatprep.mubr.msk.f32.mxu1 %vm460_vm0, %v461_v1 }
  0x61   :  { %291 = vmatmul.mubr.f32.gmra.mrb[4].mxu0 %v58_v30  ;;  %306 = vmatmul.mubr.f32.gmra.mrb[4].mxu1 %v63_v31 }
  0x62   :  { %293 = vmatprep.mubr.msk.f32.mxu0 %vm460_vm0, %v461_v1  ;;  %308 = vmatprep.mubr.msk.f32.mxu1 %vm460_vm0, %v461_v1 }
  0x65   :  { %294 = vmatmul.mubr.f32.gmra.mrb[6].mxu0 %v59_v32  ;;  %309 = vmatmul.mubr.f32.gmra.mrb[6].mxu1 %v64_v33 }
  0x66   :  { %296 = vmatprep.mubr.msk.f32.mxu0 %vm460_vm0, %v461_v1 }
  0x69   :  { %297 = vmatmul.mubr.f32.gmra.mrb[8].mxu0 %v60_v34 }
 0x12c   :  { %v156_v37 = vpop.f32.mrb[0].mxu0  ;;  %v181_v38 = vpop.f32.mrb[0].mxu1 }
 0x12d   :  { %v157_v39 = vadd.f32 %v156_v37, %v81_v35  ;;  %v286_v40 = vpop.f32.mrb[1].mxu0  ;;  %v182_v41 = vadd.f32 %v181_v38, %v86_v36  ;;  %v301_v42 = vpop.f32.mrb[1].mxu1 }
 0x12f   :  { %200 = vst [vmem:[#allocation8] sm:$0xff] %v157_v39  ;;  %205 = vst [vmem:[#allocation8 + $0x28] sm:$0xff] %v182_v41 }
 0x130   :  { %v161_v45 = vpop.f32.mrb[2].mxu0  ;;  %v186_v46 = vpop.f32.mrb[2].mxu1 }
 0x131   :  { %v162_v47 = vadd.f32 %v161_v45, %v82_v43  ;;  %v289_v48 = vpop.f32.mrb[3].mxu0  ;;  %v187_v49 = vadd.f32 %v186_v46, %v87_v44  ;;  %v304_v50 = vpop.f32.mrb[3].mxu1 }
 0x133   :  { %201 = vst [vmem:[#allocation8 + $0x8] sm:$0xff] %v162_v47  ;;  %206 = vst [vmem:[#allocation8 + $0x30] sm:$0xff] %v187_v49 }
 0x134   :  { %v166_v53 = vpop.f32.mrb[4].mxu0  ;;  %v191_v54 = vpop.f32.mrb[4].mxu1 }
 0x135   :  { %v167_v55 = vadd.f32 %v166_v53, %v83_v51  ;;  %v292_v56 = vpop.f32.mrb[5].mxu0  ;;  %v192_v57 = vadd.f32 %v191_v54, %v88_v52  ;;  %v307_v58 = vpop.f32.mrb[5].mxu1 }
 0x137   :  { %202 = vst [vmem:[#allocation8 + $0x10] sm:$0xff] %v167_v55  ;;  %207 = vst [vmem:[#allocation8 + $0x38] sm:$0xff] %v192_v57 }
 0x138   :  { %v171_v61 = vpop.f32.mrb[6].mxu0  ;;  %v196_v62 = vpop.f32.mrb[6].mxu1 }
 0x139   :  { %v172_v63 = vadd.f32 %v171_v61, %v84_v59  ;;  %v295_v0 = vpop.f32.mrb[7].mxu0  ;;  %v197_v1 = vadd.f32 %v196_v62, %v89_v60  ;;  %v310_v2 = vpop.f32.mrb[7].mxu1 }
 0x13b   :  { %203 = vst [vmem:[#allocation8 + $0x18] sm:$0xff] %v172_v63  ;;  %208 = vst [vmem:[#allocation8 + $0x40] sm:$0xff] %v197_v1 }
 0x13c   :  { %v176_v4 = vpop.f32.mrb[8].mxu0 }
 0x13d   :  { %v177_v5 = vadd.f32 %v176_v4, %v85_v3  ;;  %v298_v6 = vpop.f32.mrb[9].mxu0 }
 0x13f   :  { %204 = vst [vmem:[#allocation8 + $0x20] sm:$0xff] %v177_v5 }
 0x140   :  { %437 = shalt.err (!%p434_p0)
}
 0x141   :  { %s438_s27 = scalar_lea.hbm %s571_s3, 1152 }
 0x142   :  { %p439_p1 = scmp.ne.s32.totalorder %s571_s3, %s438_s27  ;;  %p442_p2 = scmp.lt.u32.totalorder %s438_s27, %s571_s3 }
 0x144   :  { %p444_p3 = pnand %p442_p2, %p439_p1 }
 0x146   :  { %447 = shalt.err (!%p444_p3)
}
 0x147   :  { %220 = dma.vmem_to_hbm [thread:$0]  %s215_s21, 1152, %s571_s3, [#allocation4], %s456_s24, %s456_s24, %s457_s25  }
 0x148   :  { %452 = dma.done.wait [#allocation4], 1152  }
 0x149   :  { %453 = vsyncadd [#allocation4], 4294966144 }
 0x14a   :  { %224 = vsyncpa [#allocation3], 1 }
 0x14b   :  { %225 = vsyncpa [#allocation6], 1 }
 0x14c   :  { %226 = vsyncpa [#allocation4], 1 }

</bundles_post_ra>
